<compile_context>
chip_gen: v7x
topology: tpu7x:2x2x1
jax: 0.10.0
libtpu: 0.0.40
codegen_flags: <defaults>
</compile_context>

<pallas_src>
import jax
import jax.numpy as jnp
from jax.experimental import pallas as pl
from jax.experimental.pallas import tpu as pltpu

CIN = 253
COUT = 79
COUT_PAD = 80           # sublane-aligned (8 for f32); Cout never touches the lane axis
OUT_H, OUT_W = 6, 40    # final interpolate target
OUT_HW = OUT_H * OUT_W  # 240 lanes -> lane-dense store


def _convt_leaky_gap_relu_kernel(x_ref, wt_ref, mask_ref, o_ref):
    """x_ref: (CIN, h*w) f32; wt_ref: (COUT_PAD, CIN) f32;
    mask_ref: (1, h*w) f32 crop mask with 1/((h-2)*(w-2)) folded in;
    o_ref: (COUT, OUT_HW) f32."""
    # Per-pixel channel matmul: y^T = W^T @ X, f32 on the MXU with f32 accumulation.
    yt = jnp.dot(wt_ref[...], x_ref[...], preferred_element_type=jnp.float32)
    # Leaky: where(y > 0, y, 0.148 * y)
    yt = jnp.where(yt > 0, yt, yt * 0.148)
    # ConvTranspose2d(k=1,s=1,p=1) == drop the 1-px border; adaptive_avg_pool2d(1,1)
    # == masked mean.  The prepped mask row already carries both the crop and the
    # mean scale, so this is one VPU multiply + one reduce (no iota/div/mod block).
    m = jnp.sum(yt * mask_ref[...], axis=1, keepdims=True)   # (COUT_PAD, 1)
    m = jnp.maximum(m, 0.0)                                   # ReLU
    # nearest->(24,55) -> ReLU -> nearest->(6,40) of a 1x1 map is a constant
    # broadcast; store it lane-dense as exactly (COUT, 240).
    o_ref[...] = jnp.broadcast_to(m[:COUT], o_ref.shape)


def prepare_weight(weight):
    """One-time prep: (CIN, COUT, 1, 1) f32 -> (COUT_PAD, CIN) f32 (zero rows 79..)."""
    wt = jnp.transpose(weight[:, :, 0, 0], (1, 0))            # (COUT, CIN)
    return jnp.pad(wt, ((0, COUT_PAD - COUT), (0, 0)))        # (COUT_PAD, CIN)


def prepare_mask(h, w):
    """One-time prep: (1, h*w) f32 border-crop mask with the mean scale folded in."""
    hh = jnp.arange(h)[:, None]
    ww = jnp.arange(w)[None, :]
    interior = (hh >= 1) & (hh < h - 1) & (ww >= 1) & (ww < w - 1)
    scale = 1.0 / float((h - 2) * (w - 2))
    return (interior.astype(jnp.float32) * scale).reshape(1, h * w)


def model_forward(x_nchw, wt_pad, mask_row):
    """x_nchw: (1, 253, H, W) f32; wt_pad: (80, 253) f32; mask_row: (1, H*W) f32."""
    n, cin, h, w = x_nchw.shape
    assert n == 1 and cin == CIN and h > 2 and w > 2
    x2d = x_nchw.reshape(cin, h * w)                          # free contiguous view of NCHW

    out = pl.pallas_call(
        _convt_leaky_gap_relu_kernel,
        out_shape=jax.ShapeDtypeStruct((COUT, OUT_HW), jnp.float32),
        in_specs=[
            pl.BlockSpec(memory_space=pltpu.MemorySpace.VMEM),
            pl.BlockSpec(memory_space=pltpu.MemorySpace.VMEM),
            pl.BlockSpec(memory_space=pltpu.MemorySpace.VMEM),
        ],
        out_specs=pl.BlockSpec(memory_space=pltpu.MemorySpace.VMEM),
    )(x2d, wt_pad, mask_row)                                  # (79, 240)

    # (79, 240) -> (1, 79, 6, 40) is a free view of a contiguous buffer.
    return out.reshape(1, COUT, OUT_H, OUT_W)


def _reference(x_nchw, weight):
    x_crop = x_nchw[:, :, 1:-1, 1:-1]
    w2d = weight[:, :, 0, 0]
    y = jnp.einsum("nchw,cd->ndhw", x_crop, w2d,
                   precision=jax.lax.Precision.HIGHEST)
    y = jnp.where(y > 0, y, y * 0.148)
    m = jnp.mean(y, axis=(2, 3), keepdims=True)
    m = jnp.maximum(m, 0.0)
    return jnp.broadcast_to(m, (1, weight.shape[1], OUT_H, OUT_W))


if __name__ == "__main__":
    key = jax.random.PRNGKey(0)
    k_x, k_w = jax.random.split(key)

    # Small spatial extent; channel dims (253 -> 79) are fixed by the module.
    N, H, W = 1, 18, 14
    x10 = jax.random.normal(k_x, (N, CIN, H, W), dtype=jnp.float32)
    # ConvTranspose2d weight layout: (in_channels, out_channels, kH, kW).
    weight = 0.05 * jax.random.normal(k_w, (CIN, COUT, 1, 1), dtype=jnp.float32)

    wt_pad = prepare_weight(weight)    # hoisted: reused across calls
    mask_row = prepare_mask(H, W)      # hoisted: reused across calls
    fwd = jax.jit(model_forward)

    out = jax.block_until_ready(fwd(x10, wt_pad, mask_row))
    ref = jax.block_until_ready(_reference(x10, weight))

    assert out.shape == (1, COUT, OUT_H, OUT_W), out.shape
    # All-f32 math on both paths; tolerance is conservative against possible
    # multi-pass MXU f32 rounding differences.
    assert jnp.allclose(out, ref, atol=2e-3, rtol=2e-3), "mismatch vs reference"

    print("KERNEL_OK")
</pallas_src>

<mosaic_0001>
module attributes {stable_mosaic.version = 11 : i64} {
  func.func @_convt_leaky_gap_relu_kernel(%arg0: memref<253x252xf32, #tpu.memory_space<vmem>>, %arg1: memref<80x253xf32, #tpu.memory_space<vmem>>, %arg2: memref<1x252xf32, #tpu.memory_space<vmem>>, %arg3: memref<79x240xf32, #tpu.memory_space<vmem>>) attributes {dimension_semantics = [], scalar_prefetch = 0 : i64, scratch_operands = 0 : i64, tpu.core_type = #tpu.core_type<tc>} {
    %c0 = arith.constant 0 : index
    %c0_0 = arith.constant 0 : index
    %0 = vector.load %arg1[%c0, %c0_0] : memref<80x253xf32, #tpu.memory_space<vmem>>, vector<80x253xf32>
    %c0_1 = arith.constant 0 : index
    %c0_2 = arith.constant 0 : index
    %1 = vector.load %arg0[%c0_1, %c0_2] : memref<253x252xf32, #tpu.memory_space<vmem>>, vector<253x252xf32>
    %cst = arith.constant dense<0.000000e+00> : vector<80x252xf32>
    %2 = tpu.matmul %0, %1, %cst {dimension_numbers = #tpu.dot_dimension_numbers<[1], [0], [0], [1], [0, 0, 1, 1], [], []>} : vector<80x253xf32>, vector<253x252xf32>, vector<80x252xf32> -> vector<80x252xf32>
    %cst_3 = arith.constant 0.000000e+00 : f32
    %3 = vector.broadcast %cst_3 : f32 to vector<80x252xf32>
    %4 = arith.cmpf ogt, %2, %3 : vector<80x252xf32>
    %cst_4 = arith.constant 1.480000e-01 : f32
    %5 = vector.broadcast %cst_4 : f32 to vector<80x252xf32>
    %6 = arith.mulf %2, %5 : vector<80x252xf32>
    %7 = arith.select %4, %2, %6 : vector<80x252xi1>, vector<80x252xf32>
    %c0_5 = arith.constant 0 : index
    %c0_6 = arith.constant 0 : index
    %8 = vector.load %arg2[%c0_5, %c0_6] : memref<1x252xf32, #tpu.memory_space<vmem>>, vector<1x252xf32>
    %9 = vector.broadcast %8 : vector<1x252xf32> to vector<80x252xf32>
    %10 = arith.mulf %7, %9 : vector<80x252xf32>
    %cst_7 = arith.constant dense<0.000000e+00> : vector<80xf32>
    %11 = vector.multi_reduction <add>, %10, %cst_7 [1] : vector<80x252xf32> to vector<80xf32>
    %12 = vector.shape_cast %11 : vector<80xf32> to vector<80x1xf32>
    %cst_8 = arith.constant 0.000000e+00 : f32
    %13 = vector.broadcast %cst_8 : f32 to vector<80x1xf32>
    %14 = arith.maximumf %12, %13 : vector<80x1xf32>
    %15 = vector.extract_strided_slice %14 {offsets = [0, 0], sizes = [79, 1], strides = [1, 1]} : vector<80x1xf32> to vector<79x1xf32>
    %16 = vector.shape_cast %15 : vector<79x1xf32> to vector<79x1xf32>
    %17 = vector.broadcast %16 : vector<79x1xf32> to vector<79x240xf32>
    %c0_9 = arith.constant 0 : index
    %c0_10 = arith.constant 0 : index
    %18 = vector.load %arg3[%c0_9, %c0_10] : memref<79x240xf32, #tpu.memory_space<vmem>>, vector<79x240xf32>
    tpu.vector_store %arg3[%c0_9, %c0_10], %17 {strides = array<i32>} : memref<79x240xf32, #tpu.memory_space<vmem>>, vector<79x240xf32>,
    return
  }
}

</mosaic_0001>

<bundles_post_ra>
// kernel: model_forward.1
= control target key start
LH: loop header
LB: loop body
LE: loop exit
PB: predicated region body
PF: predicated region fallthrough
CT: control target
= control target key end

     0   :  { %vm98_vm0 = vcmask 1022976   ;;  %vm129_vm1 = vcmask 1044480   ;;  %vm541_vm2 = vmmov 1   ;;  %vm353_vm8 = vcmask 1014784   ;;  %s931_s0 = inlined_call_operand.vmem [shape: f32[253,252], index: 0, kind: input, shape index: {}]   ;;  %s932_s1 = inlined_call_operand.vmem [shape: f32[80,253], index: 1, kind: input, shape index: {}]   ;;  %s933_s2 = inlined_call_operand.vmem [shape: f32[1,252], index: 2, kind: input, shape index: {}]   ;;  %s934_s3 = inlined_call_operand.vmem [shape: f32[79,240], index: 3, kind: output, shape index: {}]  }
   0x1   :  { %v35_v0 = vld [vmem:[%s931_s0 + $0x8] sm:$0xff]  ;;  %v37_v1 = vld [vmem:[%s931_s0 + $0x18] sm:$0xff]  ;;  %v34_v2 = vld [vmem:[%s931_s0] sm:$0xff] }
   0x2   :  { %v442_v3 = vpack.c.bf16 %v37_v1, %v35_v0  ;;  %v36_v4 = vld [vmem:[%s931_s0 + $0x10] sm:$0xff]  ;;  %v39_v5 = vld [vmem:[%s931_s0 + $0x28] sm:$0xff]  ;;  %v41_v6 = vld [vmem:[%s931_s0 + $0x38] sm:$0xff] }
   0x3   :  { %v444_v7 = vpack.c.bf16 %v36_v4, %v34_v2  ;;  %v446_v8 = vpack.c.bf16 %v41_v6, %v39_v5  ;;  %v38_v9 = vld [vmem:[%s931_s0 + $0x20] sm:$0xff]  ;;  %v40_v10 = vld [vmem:[%s931_s0 + $0x30] sm:$0xff]  ;;  %v43_v11 = vld [vmem:[%s931_s0 + $0x48] sm:$0xff] }
   0x4   :  { %443 = vmatprep.subr.bf16.mxu0 %v442_v3  ;;  %508 = vmatprep.subr.bf16.mxu1 %v442_v3  ;;  %v45_v12 = vld [vmem:[%s931_s0 + $0x58] sm:$0xff]  ;;  %v448_v13 = vpack.c.bf16 %v40_v10, %v38_v9  ;;  %v42_v15 = vld [vmem:[%s931_s0 + $0x40] sm:$0xff]  ;;  %v44_v16 = vld [vmem:[%s931_s0 + $0x50] sm:$0xff] }
   0x5   :  { %445 = vmatpush1.bf16.msra.mxu0 %v444_v7  ;;  %524 = vmatpush1.bf16.msra.mxu1 %v444_v7  ;;  %v450_v14 = vpack.c.bf16 %v45_v12, %v43_v11  ;;  %v47_v17 = vld [vmem:[%s931_s0 + $0x68] sm:$0xff]  ;;  %v49_v18 = vld [vmem:[%s931_s0 + $0x78] sm:$0xff]  ;;  %v452_v19 = vpack.c.bf16 %v44_v16, %v42_v15  ;;  %v46_v21 = vld [vmem:[%s931_s0 + $0x60] sm:$0xff] }
   0x6   :  { %447 = vmatprep.subr.bf16.mxu0 %v446_v8  ;;  %509 = vmatprep.subr.bf16.mxu1 %v446_v8  ;;  %v454_v20 = vpack.c.bf16 %v49_v18, %v47_v17  ;;  %v48_v22 = vld [vmem:[%s931_s0 + $0x70] sm:$0xff]  ;;  %v51_v23 = vld [vmem:[%s931_s0 + $0x88] sm:$0xff]  ;;  %v53_v24 = vld [vmem:[%s931_s0 + $0x98] sm:$0xff] }
   0x7   :  { %v456_v25 = vpack.c.bf16 %v48_v22, %v46_v21  ;;  %v458_v26 = vpack.c.bf16 %v53_v24, %v51_v23  ;;  %v50_v27 = vld [vmem:[%s931_s0 + $0x80] sm:$0xff]  ;;  %v52_v28 = vld [vmem:[%s931_s0 + $0x90] sm:$0xff]  ;;  %v55_v29 = vld [vmem:[%s931_s0 + $0xa8] sm:$0xff] }
   0x8   :  { %v57_v30 = vld [vmem:[%s931_s0 + $0xb8] sm:$0xff]  ;;  %v460_v31 = vpack.c.bf16 %v52_v28, %v50_v27  ;;  %v54_v33 = vld [vmem:[%s931_s0 + $0xa0] sm:$0xff]  ;;  %v56_v34 = vld [vmem:[%s931_s0 + $0xb0] sm:$0xff] }
   0x9   :  { %449 = vmatpush1.bf16.msra.mxu0 %v448_v13  ;;  %525 = vmatpush1.bf16.msra.mxu1 %v448_v13  ;;  %v462_v32 = vpack.c.bf16 %v57_v30, %v55_v29  ;;  %v59_v35 = vld [vmem:[%s931_s0 + $0xc8] sm:$0xff]  ;;  %v61_v36 = vld [vmem:[%s931_s0 + $0xd8] sm:$0xff]  ;;  %v464_v37 = vpack.c.bf16 %v56_v34, %v54_v33  ;;  %v58_v39 = vld [vmem:[%s931_s0 + $0xc0] sm:$0xff] }
   0xa   :  { %451 = vmatprep.subr.bf16.mxu0 %v450_v14  ;;  %510 = vmatprep.subr.bf16.mxu1 %v450_v14  ;;  %v466_v38 = vpack.c.bf16 %v61_v36, %v59_v35  ;;  %v60_v40 = vld [vmem:[%s931_s0 + $0xd0] sm:$0xff]  ;;  %v15_v41 = vld [vmem:[%s932_s1 + $0x8] sm:$0xff]  ;;  %v65_v43 = vld [vmem:[%s931_s0 + $0xf8] sm:$0xff] }
   0xb   :  { %v63_v42 = vld [vmem:[%s931_s0 + $0xe8] sm:$0xff]  ;;  %432 = vmatprep.mubr.msk.f32.mxu0 %vm98_vm0, %v15_v41  ;;  %v25_v44 = vld [vmem:[%s932_s1 + $0x58] sm:$0xff]  ;;  %v468_v45 = vpack.c.bf16 %v60_v40, %v58_v39  ;;  %v62_v47 = vld [vmem:[%s931_s0 + $0xe0] sm:$0xff] }
   0xc   :  { %437 = vmatprep.mubr.msk.f32.mxu1 %vm98_vm0, %v25_v44  ;;  %v470_v46 = vpack.c.bf16 %v65_v43, %v63_v42  ;;  %v64_v48 = vld [vmem:[%s931_s0 + $0xf0] sm:$0xff]  ;;  %v67_v49 = vld [vmem:[%s931_s0 + $0x108] sm:$0xff]  ;;  %v69_v50 = vld [vmem:[%s931_s0 + $0x118] sm:$0xff] }
   0xd   :  { %453 = vmatpush1.bf16.msra.mxu0 %v452_v19  ;;  %526 = vmatpush1.bf16.msra.mxu1 %v452_v19  ;;  %v472_v51 = vpack.c.bf16 %v64_v48, %v62_v47  ;;  %v474_v52 = vpack.c.bf16 %v69_v50, %v67_v49  ;;  %v66_v53 = vld [vmem:[%s931_s0 + $0x100] sm:$0xff]  ;;  %v68_v54 = vld [vmem:[%s931_s0 + $0x110] sm:$0xff]  ;;  %v71_v55 = vld [vmem:[%s931_s0 + $0x128] sm:$0xff] }
   0xe   :  { %455 = vmatprep.subr.bf16.mxu0 %v454_v20  ;;  %511 = vmatprep.subr.bf16.mxu1 %v454_v20  ;;  %v73_v56 = vld [vmem:[%s931_s0 + $0x138] sm:$0xff]  ;;  %v476_v57 = vpack.c.bf16 %v68_v54, %v66_v53  ;;  %v70_v59 = vld [vmem:[%s931_s0 + $0x120] sm:$0xff]  ;;  %v72_v60 = vld [vmem:[%s931_s0 + $0x130] sm:$0xff] }
   0xf   :  { %v478_v58 = vpack.c.bf16 %v73_v56, %v71_v55  ;;  %v75_v61 = vld [vmem:[%s931_s0 + $0x148] sm:$0xff]  ;;  %v77_v62 = vld [vmem:[%s931_s0 + $0x158] sm:$0xff]  ;;  %v480_v63 = vpack.c.bf16 %v72_v60, %v70_v59  ;;  %v74_v1 = vld [vmem:[%s931_s0 + $0x140] sm:$0xff] }
  0x10   :  { %v482_v0 = vpack.c.bf16 %v77_v62, %v75_v61  ;;  %v76_v2 = vld [vmem:[%s931_s0 + $0x150] sm:$0xff]  ;;  %v79_v3 = vld [vmem:[%s931_s0 + $0x168] sm:$0xff]  ;;  %v81_v4 = vld [vmem:[%s931_s0 + $0x178] sm:$0xff] }
  0x11   :  { %457 = vmatpush1.bf16.msra.mxu0 %v456_v25  ;;  %527 = vmatpush1.bf16.msra.mxu1 %v456_v25  ;;  %v484_v5 = vpack.c.bf16 %v76_v2, %v74_v1  ;;  %v486_v6 = vpack.c.bf16 %v81_v4, %v79_v3  ;;  %v78_v7 = vld [vmem:[%s931_s0 + $0x160] sm:$0xff]  ;;  %v80_v8 = vld [vmem:[%s931_s0 + $0x170] sm:$0xff]  ;;  %v83_v9 = vld [vmem:[%s931_s0 + $0x188] sm:$0xff] }
  0x12   :  { %459 = vmatprep.subr.bf16.mxu0 %v458_v26  ;;  %512 = vmatprep.subr.bf16.mxu1 %v458_v26  ;;  %v85_v10 = vld [vmem:[%s931_s0 + $0x198] sm:$0xff]  ;;  %v488_v11 = vpack.c.bf16 %v80_v8, %v78_v7  ;;  %v82_v13 = vld [vmem:[%s931_s0 + $0x180] sm:$0xff]  ;;  %v84_v14 = vld [vmem:[%s931_s0 + $0x190] sm:$0xff] }
  0x13   :  { %v490_v12 = vpack.c.bf16 %v85_v10, %v83_v9  ;;  %v87_v15 = vld [vmem:[%s931_s0 + $0x1a8] sm:$0xff]  ;;  %v89_v16 = vld [vmem:[%s931_s0 + $0x1b8] sm:$0xff]  ;;  %v492_v17 = vpack.c.bf16 %v84_v14, %v82_v13  ;;  %v86_v19 = vld [vmem:[%s931_s0 + $0x1a0] sm:$0xff] }
  0x14   :  { %v494_v18 = vpack.c.bf16 %v89_v16, %v87_v15  ;;  %v88_v20 = vld [vmem:[%s931_s0 + $0x1b0] sm:$0xff]  ;;  %v91_v21 = vld [vmem:[%s931_s0 + $0x1c8] sm:$0xff]  ;;  %v93_v22 = vld [vmem:[%s931_s0 + $0x1d8] sm:$0xff] }
  0x15   :  { %461 = vmatpush1.bf16.msra.mxu0 %v460_v31  ;;  %528 = vmatpush1.bf16.msra.mxu1 %v460_v31  ;;  %v496_v23 = vpack.c.bf16 %v88_v20, %v86_v19  ;;  %v498_v24 = vpack.c.bf16 %v93_v22, %v91_v21  ;;  %v90_v25 = vld [vmem:[%s931_s0 + $0x1c0] sm:$0xff]  ;;  %v92_v26 = vld [vmem:[%s931_s0 + $0x1d0] sm:$0xff]  ;;  %v95_v27 = vld [vmem:[%s931_s0 + $0x1e8] sm:$0xff] }
  0x16   :  { %463 = vmatprep.subr.bf16.mxu0 %v462_v32  ;;  %513 = vmatprep.subr.bf16.mxu1 %v462_v32  ;;  %v97_v28 = vld [vmem:[%s931_s0 + $0x1f8] sm:$0x1f]  ;;  %v500_v29 = vpack.c.bf16 %v92_v26, %v90_v25  ;;  %v94_v31 = vld [vmem:[%s931_s0 + $0x1e0] sm:$0xff]  ;;  %v96_v32 = vld [vmem:[%s931_s0 + $0x1f0] sm:$0x1f] }
  0x17   :  { %v502_v30 = vpack.c.bf16 %v97_v28, %v95_v27  ;;  %vm503_vm3 = vmpackc.low %vm129_vm1, %vm541_vm2  ;;  %v505_v33 = vpack.c.bf16 %v96_v32, %v94_v31  ;;  %v14_v34 = vld [vmem:[%s932_s1] sm:$0xff]  ;;  %v24_v35 = vld [vmem:[%s932_s1 + $0x50] sm:$0xff] }
  0x18   :  { %v17_v36 = vld [vmem:[%s932_s1 + $0x18] sm:$0xff]  ;;  %v26_v39 = vld [vmem:[%s932_s1 + $0x60] sm:$0xff]  ;;  %v19_v40 = vld [vmem:[%s932_s1 + $0x28] sm:$0xff] }
  0x19   :  { %465 = vmatpush1.bf16.msra.mxu0 %v464_v37  ;;  %529 = vmatpush1.bf16.msra.mxu1 %v464_v37  ;;  %v27_v37 = vld [vmem:[%s932_s1 + $0x68] sm:$0xff]  ;;  %v29_v41 = vld [vmem:[%s932_s1 + $0x78] sm:$0xff]  ;;  %v18_v42 = vld [vmem:[%s932_s1 + $0x20] sm:$0xff] }
  0x1a   :  { %467 = vmatprep.subr.bf16.mxu0 %v466_v38  ;;  %514 = vmatprep.subr.bf16.mxu1 %v466_v38  ;;  %v16_v38 = vld [vmem:[%s932_s1 + $0x10] sm:$0xff]  ;;  %v21_v44 = vld [vmem:[%s932_s1 + $0x38] sm:$0xff]  ;;  %v30_v47 = vld [vmem:[%s932_s1 + $0x80] sm:$0xff] }
  0x1b   :  { %v28_v43 = vld [vmem:[%s932_s1 + $0x70] sm:$0xff]  ;;  %v23_v48 = vld [vmem:[%s932_s1 + $0x48] sm:$0xff]  ;;  %v33_v49 = vld [vmem:[%s932_s1 + $0x98] sm:$0xff] }
  0x1c   :  { %v22_v50 = vld [vmem:[%s932_s1 + $0x40] sm:$0xff] }
  0x1d   :  { %469 = vmatpush1.bf16.msra.mxu0 %v468_v45  ;;  %530 = vmatpush1.bf16.msra.mxu1 %v468_v45  ;;  %v31_v45 = vld [vmem:[%s932_s1 + $0x88] sm:$0xff]  ;;  %v321_v55 = vld [vmem:[%s933_s2] sm:$0x3] }
  0x1e   :  { %471 = vmatprep.subr.bf16.mxu0 %v470_v46  ;;  %515 = vmatprep.subr.bf16.mxu1 %v470_v46  ;;  %v20_v46 = vld [vmem:[%s932_s1 + $0x30] sm:$0xff] }
  0x21   :  { %473 = vmatpush1.bf16.msra.mxu0 %v472_v51  ;;  %531 = vmatpush1.bf16.msra.mxu1 %v472_v51  ;;  %v32_v51 = vld [vmem:[%s932_s1 + $0x90] sm:$0xff] }
  0x22   :  { %475 = vmatprep.subr.bf16.mxu0 %v474_v52  ;;  %516 = vmatprep.subr.bf16.mxu1 %v474_v52  ;;  %v323_v52 = vlaneseq }
  0x24   :  { %v324_v53 = vshrl.u32 %v323_v52, 7 }
  0x25   :  { %477 = vmatpush1.bf16.msra.mxu0 %v476_v57  ;;  %532 = vmatpush1.bf16.msra.mxu1 %v476_v57 }
  0x26   :  { %479 = vmatprep.subr.bf16.mxu0 %v478_v58  ;;  %517 = vmatprep.subr.bf16.mxu1 %v478_v58  ;;  %v325_v54 = vsub.s32 0, %v324_v53  ;;  %v329_v58 = vsub.s32 1, %v324_v53 }
  0x29   :  { %481 = vmatpush1.bf16.msra.mxu0 %v480_v63  ;;  %533 = vmatpush1.bf16.msra.mxu1 %v480_v63  ;;  %v827_v63 = vrot.slane %v321_v55, %v325_v54 }
  0x2a   :  { %483 = vmatprep.subr.bf16.mxu0 %v482_v0  ;;  %518 = vmatprep.subr.bf16.mxu1 %v482_v0 }
  0x2d   :  { %485 = vmatpush1.bf16.msra.mxu0 %v484_v5  ;;  %534 = vmatpush1.bf16.msra.mxu1 %v484_v5  ;;  %v829_v5 = vrot.slane %v321_v55, %v329_v58 }
  0x2e   :  { %487 = vmatprep.subr.bf16.mxu0 %v486_v6  ;;  %519 = vmatprep.subr.bf16.mxu1 %v486_v6 }
  0x31   :  { %489 = vmatpush1.bf16.msra.mxu0 %v488_v11  ;;  %535 = vmatpush1.bf16.msra.mxu1 %v488_v11 }
  0x32   :  { %491 = vmatprep.subr.bf16.mxu0 %v490_v12  ;;  %520 = vmatprep.subr.bf16.mxu1 %v490_v12 }
  0x35   :  { %493 = vmatpush1.bf16.msra.mxu0 %v492_v17  ;;  %536 = vmatpush1.bf16.msra.mxu1 %v492_v17 }
  0x36   :  { %495 = vmatprep.subr.bf16.mxu0 %v494_v18  ;;  %521 = vmatprep.subr.bf16.mxu1 %v494_v18 }
  0x39   :  { %497 = vmatpush1.bf16.msra.mxu0 %v496_v23  ;;  %537 = vmatpush1.bf16.msra.mxu1 %v496_v23 }
  0x3a   :  { %499 = vmatprep.subr.bf16.mxu0 %v498_v24  ;;  %522 = vmatprep.subr.bf16.mxu1 %v498_v24 }
  0x3d   :  { %501 = vmatpush1.bf16.msra.mxu0 %v500_v29  ;;  %538 = vmatpush1.bf16.msra.mxu1 %v500_v29 }
  0x3e   :  { %504 = vmatprep.subr.msk.bf16.mxu0 %vm503_vm3, %v502_v30  ;;  %523 = vmatprep.subr.msk.bf16.mxu1 %vm503_vm3, %v502_v30 }
  0x41   :  { %507 = vmatpush1.bf16.msk.msra.mxu0 %vm503_vm3, %v505_v33  ;;  %539 = vmatpush1.bf16.msk.msra.mxu1 %vm503_vm3, %v505_v33 }
  0x44   :  { %201 = vmatmul.mubr.f32.vlgmr.msra.gmra.mrb[0].mxu0 %v14_v34  ;;  %231 = vmatmul.mubr.f32.vlgmr.msra.gmra.mrb[0].mxu1 %v24_v35 }
  0x45   :  { %433 = vmatprep.mubr.msk.f32.mxu0 %vm98_vm0, %v17_v36  ;;  %438 = vmatprep.mubr.msk.f32.mxu1 %vm98_vm0, %v27_v37 }
  0x48   :  { %207 = vmatmul.mubr.f32.gmra.mrb[2].mxu0 %v16_v38  ;;  %237 = vmatmul.mubr.f32.gmra.mrb[2].mxu1 %v26_v39 }
  0x49   :  { %434 = vmatprep.mubr.msk.f32.mxu0 %vm98_vm0, %v19_v40  ;;  %439 = vmatprep.mubr.msk.f32.mxu1 %vm98_vm0, %v29_v41 }
  0x4c   :  { %213 = vmatmul.mubr.f32.gmra.mrb[4].mxu0 %v18_v42  ;;  %243 = vmatmul.mubr.f32.gmra.mrb[4].mxu1 %v28_v43 }
  0x4d   :  { %435 = vmatprep.mubr.msk.f32.mxu0 %vm98_vm0, %v21_v44  ;;  %440 = vmatprep.mubr.msk.f32.mxu1 %vm98_vm0, %v31_v45 }
  0x50   :  { %219 = vmatmul.mubr.f32.gmra.mrb[6].mxu0 %v20_v46  ;;  %249 = vmatmul.mubr.f32.gmra.mrb[6].mxu1 %v30_v47 }
  0x51   :  { %436 = vmatprep.mubr.msk.f32.mxu0 %vm98_vm0, %v23_v48  ;;  %441 = vmatprep.mubr.msk.f32.mxu1 %vm98_vm0, %v33_v49 }
  0x54   :  { %225 = vmatmul.mubr.f32.gmra.mrb[8].mxu0 %v22_v50  ;;  %255 = vmatmul.mubr.f32.gmra.mrb[8].mxu1 %v32_v51 }
 0x117   :  { %v202_v56 = vpop.f32.mrb[0].mxu0  ;;  %v232_v57 = vpop.f32.mrb[0].mxu1 }
 0x118   :  { %vm261_vm4 = vcmp.gt.f32.partialorder %v202_v56, 0.0  ;;  %v281_v59 = vmul.f32 0.148, %v202_v56  ;;  %vm271_vm5 = vcmp.gt.f32.partialorder %v232_v57, 0.0  ;;  %v291_v60 = vmul.f32 0.148, %v232_v57 }
 0x119   :  { %v204_v61 = vpop.f32.mrb[1].mxu0  ;;  %v234_v62 = vpop.f32.mrb[1].mxu1 }
 0x11a   :  { %vm262_vm6 = vcmp.gt.f32.partialorder %v204_v61, 0.0  ;;  %v282_v0 = vmul.f32 0.148, %v204_v61  ;;  %vm272_vm7 = vcmp.gt.f32.partialorder %v234_v62, 0.0  ;;  %v292_v1 = vmul.f32 0.148, %v234_v62 }
 0x11b   :  { %v208_v2 = vpop.f32.mrb[2].mxu0  ;;  %v238_v3 = vpop.f32.mrb[2].mxu1  ;;  %v311_v4 = vsel %vm271_vm5, %v232_v57, %v291_v60  ;;  %v301_v6 = vsel %vm261_vm4, %v202_v56, %v281_v59 }
 0x11c   :  { %v302_v7 = vsel %vm262_vm6, %v204_v61, %v282_v0  ;;  %v312_v8 = vsel %vm272_vm7, %v234_v62, %v292_v1  ;;  %vm263_vm9 = vcmp.gt.f32.partialorder %v208_v2, 0.0  ;;  %v283_v9 = vmul.f32 0.148, %v208_v2  ;;  %v210_v10 = vpop.f32.mrb[3].mxu0  ;;  %v240_v11 = vpop.f32.mrb[3].mxu1 }
 0x11d   :  { %vm273_vm10 = vcmp.gt.f32.partialorder %v238_v3, 0.0  ;;  %v293_v12 = vmul.f32 0.148, %v238_v3  ;;  %vm264_vm11 = vcmp.gt.f32.partialorder %v210_v10, 0.0  ;;  %v284_v13 = vmul.f32 0.148, %v210_v10 }
 0x11e   :  { %v303_v14 = vsel %vm263_vm9, %v208_v2, %v283_v9  ;;  %vm274_vm12 = vcmp.gt.f32.partialorder %v240_v11, 0.0  ;;  %v294_v15 = vmul.f32 0.148, %v240_v11  ;;  %v343_v16 = vmul.f32 %v827_v63, %v311_v4 }
 0x11f   :  { %v313_v17 = vsel %vm273_vm10, %v238_v3, %v293_v12  ;;  %v304_v18 = vsel %vm264_vm11, %v210_v10, %v284_v13  ;;  %v214_v19 = vpop.f32.mrb[4].mxu0  ;;  %v244_v20 = vpop.f32.mrb[4].mxu1  ;;  %v344_v21 = vmul.f32 %v829_v5, %v312_v8  ;;  %v333_v22 = vmul.f32 %v827_v63, %v301_v6 }
 0x120   :  { %v314_v23 = vsel %vm274_vm12, %v240_v11, %v294_v15  ;;  %vm265_vm13 = vcmp.gt.f32.partialorder %v214_v19, 0.0  ;;  %v285_v24 = vmul.f32 0.148, %v214_v19  ;;  %vm275_vm14 = vcmp.gt.f32.partialorder %v244_v20, 0.0  ;;  %v216_v25 = vpop.f32.mrb[5].mxu0  ;;  %v246_v26 = vpop.f32.mrb[5].mxu1 }
 0x121   :  { %v295_v27 = vmul.f32 0.148, %v244_v20  ;;  %vm266_vm15 = vcmp.gt.f32.partialorder %v216_v25, 0.0  ;;  %v286_v28 = vmul.f32 0.148, %v216_v25  ;;  %vm276_vm0 = vcmp.gt.f32.partialorder %v246_v26, 0.0 }
 0x122   :  { %v305_v29 = vsel %vm265_vm13, %v214_v19, %v285_v24  ;;  %v296_v30 = vmul.f32 0.148, %v246_v26  ;;  %v374_v31 = vsel %vm353_vm8, %v344_v21, 0.0  ;;  %v334_v32 = vmul.f32 %v829_v5, %v302_v7 }
 0x123   :  { %v315_v33 = vsel %vm275_vm14, %v244_v20, %v295_v27  ;;  %v306_v34 = vsel %vm266_vm15, %v216_v25, %v286_v28  ;;  %v375_v35 = vadd.f32 %v374_v31, %v343_v16  ;;  %v220_v36 = vpop.f32.mrb[6].mxu0  ;;  %v250_v37 = vpop.f32.mrb[6].mxu1  ;;  %v335_v38 = vmul.f32 %v827_v63, %v303_v14 }
 0x124   :  { %v316_v39 = vsel %vm276_vm0, %v246_v26, %v296_v30  ;;  %v354_v40 = vsel %vm353_vm8, %v334_v32, 0.0  ;;  %vm267_vm1 = vcmp.gt.f32.partialorder %v220_v36, 0.0  ;;  %v287_v41 = vmul.f32 0.148, %v220_v36  ;;  %v222_v42 = vpop.f32.mrb[7].mxu0  ;;  %v252_v43 = vpop.f32.mrb[7].mxu1 }
 0x125   :  { %376 = vadd.xlane.f32.xlu1 %v375_v35  ;;  %v355_v44 = vadd.f32 %v354_v40, %v333_v22  ;;  %vm277_vm2 = vcmp.gt.f32.partialorder %v250_v37, 0.0  ;;  %v297_v45 = vmul.f32 0.148, %v250_v37  ;;  %vm268_vm3 = vcmp.gt.f32.partialorder %v222_v42, 0.0 }
 0x126   :  { %v307_v46 = vsel %vm267_vm1, %v220_v36, %v287_v41  ;;  %v288_v47 = vmul.f32 0.148, %v222_v42  ;;  %vm278_vm4 = vcmp.gt.f32.partialorder %v252_v43, 0.0  ;;  %v298_v48 = vmul.f32 0.148, %v252_v43 }
 0x127   :  { %356 = vadd.xlane.f32.xlu0 %v355_v44  ;;  %v317_v49 = vsel %vm277_vm2, %v250_v37, %v297_v45  ;;  %v336_v50 = vmul.f32 %v829_v5, %v304_v18  ;;  %v226_v51 = vpop.f32.mrb[8].mxu0  ;;  %v256_v52 = vpop.f32.mrb[8].mxu1  ;;  %v345_v53 = vmul.f32 %v827_v63, %v313_v17  ;;  %v346_v54 = vmul.f32 %v829_v5, %v314_v23 }
 0x128   :  { %v308_v55 = vsel %vm268_vm3, %v222_v42, %v288_v47  ;;  %v318_v56 = vsel %vm278_vm4, %v252_v43, %v298_v48  ;;  %vm269_vm5 = vcmp.gt.f32.partialorder %v226_v51, 0.0  ;;  %v289_v57 = vmul.f32 0.148, %v226_v51  ;;  %v228_v58 = vpop.f32.mrb[9].mxu0  ;;  %v258_v59 = vpop.f32.mrb[9].mxu1 }
 0x129   :  { %v358_v60 = vsel %vm353_vm8, %v336_v50, 0.0  ;;  %vm279_vm6 = vcmp.gt.f32.partialorder %v256_v52, 0.0  ;;  %v299_v61 = vmul.f32 0.148, %v256_v52  ;;  %vm270_vm7 = vcmp.gt.f32.partialorder %v228_v58, 0.0 }
 0x12a   :  { %v359_v62 = vadd.f32 %v358_v60, %v335_v38  ;;  %v309_v0 = vsel %vm269_vm5, %v226_v51, %v289_v57  ;;  %v290_v1 = vmul.f32 0.148, %v228_v58  ;;  %vm280_vm9 = vcmp.gt.f32.partialorder %v258_v59, 0.0 }
 0x12b   :  { %v319_v2 = vsel %vm279_vm6, %v256_v52, %v299_v61  ;;  %v300_v3 = vmul.f32 0.148, %v258_v59  ;;  %v378_v4 = vsel %vm353_vm8, %v346_v54, 0.0  ;;  %v337_v6 = vmul.f32 %v827_v63, %v305_v29 }
 0x12c   :  { %360 = vadd.xlane.f32.xlu0 %v359_v62  ;;  %v310_v7 = vsel %vm270_vm7, %v228_v58, %v290_v1  ;;  %v379_v8 = vadd.f32 %v378_v4, %v345_v53  ;;  %v338_v9 = vmul.f32 %v829_v5, %v306_v34  ;;  %v347_v10 = vmul.f32 %v827_v63, %v315_v33 }
 0x12d   :  { %v342_v11 = vmul.f32 %v829_v5, %v310_v7  ;;  %v320_v12 = vsel %vm280_vm9, %v258_v59, %v300_v3  ;;  %v348_v13 = vmul.f32 %v829_v5, %v316_v39  ;;  %v339_v14 = vmul.f32 %v827_v63, %v307_v46 }
 0x12e   :  { %v352_v15 = vmul.f32 %v829_v5, %v320_v12  ;;  %v362_v16 = vsel %vm353_vm8, %v338_v9, 0.0  ;;  %v340_v17 = vmul.f32 %v829_v5, %v308_v55  ;;  %v341_v18 = vmul.f32 %v827_v63, %v309_v0 }
 0x12f   :  { %v363_v19 = vadd.f32 %v362_v16, %v337_v6  ;;  %v382_v20 = vsel %vm353_vm8, %v348_v13, 0.0  ;;  %v370_v21 = vsel %vm353_vm8, %v342_v11, 0.0  ;;  %v351_v22 = vmul.f32 %v827_v63, %v319_v2 }
 0x130   :  { %380 = vadd.xlane.f32.xlu0 %v379_v8  ;;  %v383_v23 = vadd.f32 %v382_v20, %v347_v10  ;;  %v366_v24 = vsel %vm353_vm8, %v340_v17, 0.0  ;;  %v371_v25 = vadd.f32 %v370_v21, %v341_v18  ;;  %v390_v26 = vsel %vm353_vm8, %v352_v15, 0.0 }
 0x131   :  { %364 = vadd.xlane.f32.xlu1 %v363_v19  ;;  %v367_v27 = vadd.f32 %v366_v24, %v339_v14  ;;  %v391_v28 = vadd.f32 %v390_v26, %v351_v22  ;;  %v349_v29 = vmul.f32 %v827_v63, %v317_v49  ;;  %v350_v30 = vmul.f32 %v829_v5, %v318_v56 }
 0x132   :  { %vm405_vm10 = vcmask 916480  }
 0x133   :  { %v386_v31 = vsel %vm353_vm8, %v350_v30, 0.0  ;;  %vm424_vm8 = vcmask 915456  }
 0x134   :  { %372 = vadd.xlane.f32.xlu0 %v371_v25  ;;  %v387_v32 = vadd.f32 %v386_v31, %v349_v29 }
 0x135   :  { %384 = vadd.xlane.f32.xlu1 %v383_v23 }
 0x138   :  { %388 = vadd.xlane.f32.xlu0 %v387_v32 }
 0x139   :  { %368 = vadd.xlane.f32.xlu1 %v367_v27 }
 0x13d   :  { %392 = vadd.xlane.f32.xlu1 %v391_v28 }
 0x1b2   :  { %v377_v33 = vpop.xlane.xlu1 %376 }
 0x1b3   :  { %v399_v34 = vmax.f32 %v377_v33, 0.0 }
 0x1b4   :  { %v357_v35 = vpop.xlane.xlu0 %356 }
 0x1b5   :  { %415 = vst [vmem:[%s934_s3 + $0x50] sm:$0xff] %v399_v34  ;;  %416 = vst.msk [vmem:[%s934_s3 + $0x58] sm:$0xff] %vm405_vm10, %v399_v34  ;;  %v394_v63 = vmax.f32 %v357_v35, 0.0 }
 0x1b7   :  { %404 = vst [vmem:[%s934_s3] sm:$0xff] %v394_v63  ;;  %406 = vst.msk [vmem:[%s934_s3 + $0x8] sm:$0xff] %vm405_vm10, %v394_v63 }
 0x1b9   :  { %v361_v5 = vpop.xlane.xlu0 %360 }
 0x1ba   :  { %v395_v36 = vmax.f32 %v361_v5, 0.0 }
 0x1bc   :  { %407 = vst [vmem:[%s934_s3 + $0x10] sm:$0xff] %v395_v36  ;;  %408 = vst.msk [vmem:[%s934_s3 + $0x18] sm:$0xff] %vm405_vm10, %v395_v36 }
 0x1bd   :  { %v381_v37 = vpop.xlane.xlu0 %380 }
 0x1be   :  { %v400_v38 = vmax.f32 %v381_v37, 0.0  ;;  %v365_v39 = vpop.xlane.xlu1 %364 }
 0x1bf   :  { %v396_v40 = vmax.f32 %v365_v39, 0.0 }
 0x1c0   :  { %417 = vst [vmem:[%s934_s3 + $0x60] sm:$0xff] %v400_v38  ;;  %418 = vst.msk [vmem:[%s934_s3 + $0x68] sm:$0xff] %vm405_vm10, %v400_v38 }
 0x1c1   :  { %409 = vst [vmem:[%s934_s3 + $0x20] sm:$0xff] %v396_v40  ;;  %410 = vst.msk [vmem:[%s934_s3 + $0x28] sm:$0xff] %vm405_vm10, %v396_v40  ;;  %v373_v41 = vpop.xlane.xlu0 %372 }
 0x1c2   :  { %v385_v42 = vpop.xlane.xlu1 %384  ;;  %v398_v43 = vmax.f32 %v373_v41, 0.0 }
 0x1c3   :  { %v401_v44 = vmax.f32 %v385_v42, 0.0 }
 0x1c4   :  { %413 = vst [vmem:[%s934_s3 + $0x40] sm:$0xff] %v398_v43  ;;  %414 = vst.msk [vmem:[%s934_s3 + $0x48] sm:$0xff] %vm405_vm10, %v398_v43 }
 0x1c5   :  { %419 = vst [vmem:[%s934_s3 + $0x70] sm:$0xff] %v401_v44  ;;  %420 = vst.msk [vmem:[%s934_s3 + $0x78] sm:$0xff] %vm405_vm10, %v401_v44  ;;  %v389_v45 = vpop.xlane.xlu0 %388 }
 0x1c6   :  { %v369_v46 = vpop.xlane.xlu1 %368  ;;  %v402_v47 = vmax.f32 %v389_v45, 0.0 }
 0x1c7   :  { %v397_v48 = vmax.f32 %v369_v46, 0.0 }
 0x1c8   :  { %421 = vst [vmem:[%s934_s3 + $0x80] sm:$0xff] %v402_v47  ;;  %422 = vst.msk [vmem:[%s934_s3 + $0x88] sm:$0xff] %vm405_vm10, %v402_v47 }
 0x1c9   :  { %411 = vst [vmem:[%s934_s3 + $0x30] sm:$0xff] %v397_v48  ;;  %412 = vst.msk [vmem:[%s934_s3 + $0x38] sm:$0xff] %vm405_vm10, %v397_v48 }
 0x1ca   :  { %v393_v49 = vpop.xlane.xlu1 %392 }
 0x1cb   :  { %v403_v50 = vmax.f32 %v393_v49, 0.0 }
 0x1cd   :  { %423 = vst [vmem:[%s934_s3 + $0x90] sm:$0x7f] %v403_v50  ;;  %425 = vst.msk [vmem:[%s934_s3 + $0x98] sm:$0x7f] %vm424_vm8, %v403_v50 }

</bundles_post_ra>
